<compile_context>
chip_gen: v7x
topology: tpu7x:2x2x1
jax: 0.10.0
libtpu: 0.0.40
codegen_flags: <defaults>
</compile_context>

<pallas_src>
import jax
import jax.numpy as jnp
from jax.experimental import pallas as pl
from jax.experimental.pallas import tpu as pltpu


def _rec_kernel(tv_ref, nv_ref, o_ref):
    # tv_ref / nv_ref: (E+2, tile_b) f32, batch on lanes.
    # Rows [0, E) are embeddings; rows E, E+1 carry (bias, 1) on the track side and
    # (1, bias) on the name side, so multiply + reduce yields dot + tb + nb in one pass.
    z = jnp.sum(tv_ref[...] * nv_ref[...], axis=0, keepdims=True)  # (1, tile_b)
    o_ref[...] = jax.nn.sigmoid(z)


def _augmented_tables(params):
    """Lane-major (E+2, num_rows) tables with the biases folded into two extra rows."""
    track_emb = params["track_embedding"].astype(jnp.float32)   # (num_track, E)
    name_emb = params["name_embedding"].astype(jnp.float32)     # (num_name, E)
    track_bias = params["track_bias"].astype(jnp.float32)       # (num_track, 1)
    name_bias = params["name_bias"].astype(jnp.float32)         # (num_name, 1)

    ones_t = jnp.ones_like(track_bias)
    ones_n = jnp.ones_like(name_bias)
    # track rows: [emb..., bias, 1] ; name rows: [emb..., 1, bias]
    track_tab = jnp.concatenate([track_emb, track_bias, ones_t], axis=1).T  # (E+2, num_track)
    name_tab = jnp.concatenate([name_emb, ones_n, name_bias], axis=1).T     # (E+2, num_name)
    return track_tab, name_tab


def recommender_forward(x, params, *, tile_b=1024):
    """x: (B, 2) integer indices [track_id, name_id]. Returns (B,) float32 scores."""
    track_tab, name_tab = _augmented_tables(params)   # table-sized work only (tiny)
    Ea = track_tab.shape[0]                           # E + 2

    B = x.shape[0]
    t_idx = x[:, 0].astype(jnp.int32)
    n_idx = x[:, 1].astype(jnp.int32)

    # Lane-dense tiling: round the batch up to a multiple of 128 lanes; tile_b is a
    # multiple of 128 and clamped so small batches don't over-pad.
    lane = 128
    tile = max(lane, min(int(tile_b), pl.cdiv(B, lane) * lane))
    tile = (tile // lane) * lane
    Bp = pl.cdiv(B, tile) * tile

    pad = Bp - B
    if pad:
        # Pad only the index vectors (cheap); index 0 is always valid, padded scores
        # are sliced off before returning.
        t_idx = jnp.pad(t_idx, (0, pad))
        n_idx = jnp.pad(n_idx, (0, pad))

    # Gather directly into the (E+2, Bp) lane-major layout (one gather per side; the
    # bias rows ride along for free, so no separate bias streams and no transpose of
    # batch-sized activations).
    # TODO(synk): for production-sized embedding tables, fuse this gather into the
    # kernel (scalar-prefetched indices + per-row DMA with memory_space=pl.ANY) so the
    # gathered activations never round-trip through HBM.
    tv = jnp.take(track_tab, t_idx, axis=1)   # (E+2, Bp)
    nv = jnp.take(name_tab, n_idx, axis=1)    # (E+2, Bp)

    grid = (Bp // tile,)
    out = pl.pallas_call(
        _rec_kernel,
        out_shape=jax.ShapeDtypeStruct((1, Bp), jnp.float32),
        grid_spec=pltpu.PrefetchScalarGridSpec(
            num_scalar_prefetch=0,
            grid=grid,
            in_specs=[
                pl.BlockSpec((Ea, tile), lambda i: (0, i)),
                pl.BlockSpec((Ea, tile), lambda i: (0, i)),
            ],
            out_specs=pl.BlockSpec((1, tile), lambda i: (0, i)),
        ),
        compiler_params=pltpu.CompilerParams(
            dimension_semantics=("parallel",),
            vmem_limit_bytes=32 * 1024 * 1024,  # explicit; usage is ~1-2 MiB even at tile_b=2048
        ),
    )(tv, nv)

    return out[0, :B]   # squeeze -> (B,)


def init_params(key, num_track, num_name, embedding_size):
    k1, k2, k3, k4 = jax.random.split(key, 4)
    return {
        "track_embedding": jax.random.normal(k1, (num_track, embedding_size), jnp.float32),
        "name_embedding": jax.random.normal(k2, (num_name, embedding_size), jnp.float32),
        "track_bias": jax.random.normal(k3, (num_track, 1), jnp.float32),
        "name_bias": jax.random.normal(k4, (num_name, 1), jnp.float32),
    }


if __name__ == "__main__":
    key = jax.random.PRNGKey(0)
    num_track, num_name, embedding_size = 50, 30, 32
    batch = 8

    pkey, ikey1, ikey2 = jax.random.split(key, 3)
    params = init_params(pkey, num_track, num_name, embedding_size)

    track_ids = jax.random.randint(ikey1, (batch, 1), 0, num_track, dtype=jnp.int32)
    name_ids = jax.random.randint(ikey2, (batch, 1), 0, num_name, dtype=jnp.int32)
    x = jnp.concatenate([track_ids, name_ids], axis=1)  # (B, 2)

    out = recommender_forward(x, params)
    jax.block_until_ready(out)

    # Pure-JAX reference check (original PyTorch formula / layout).
    tv = params["track_embedding"][x[:, 0]]
    nv = params["name_embedding"][x[:, 1]]
    tb = params["track_bias"][x[:, 0]][:, 0]
    nb = params["name_bias"][x[:, 1]][:, 0]
    ref = jax.nn.sigmoid(jnp.sum(tv * nv, axis=1) + tb + nb)
    assert out.shape == (batch,)
    assert jnp.allclose(out, ref, atol=1e-5, rtol=1e-5)

    print("KERNEL_OK")
</pallas_src>

<mosaic_0001>
module attributes {stable_mosaic.version = 11 : i64} {
  func.func @_rec_kernel(%arg0: i32, %arg1: memref<34x128xf32, #tpu.memory_space<vmem>>, %arg2: memref<34x128xf32, #tpu.memory_space<vmem>>, %arg3: memref<1x128xf32, #tpu.memory_space<vmem>>) attributes {dimension_semantics = [#tpu.dimension_semantics<parallel>], iteration_bounds = array<i64: 1>, scalar_prefetch = 0 : i64, scratch_operands = 0 : i64, tpu.core_type = #tpu.core_type<tc>, window_params = [{transform_indices = @transform_0, window_bounds = array<i64: 34, 128>}, {transform_indices = @transform_1, window_bounds = array<i64: 34, 128>}, {transform_indices = @transform_2, window_bounds = array<i64: 1, 128>}]} {
    %c0 = arith.constant 0 : index
    %c0_0 = arith.constant 0 : index
    %0 = vector.load %arg1[%c0, %c0_0] : memref<34x128xf32, #tpu.memory_space<vmem>>, vector<34x128xf32>
    %c0_1 = arith.constant 0 : index
    %c0_2 = arith.constant 0 : index
    %1 = vector.load %arg2[%c0_1, %c0_2] : memref<34x128xf32, #tpu.memory_space<vmem>>, vector<34x128xf32>
    %2 = arith.mulf %0, %1 : vector<34x128xf32>
    %cst = arith.constant dense<0.000000e+00> : vector<128xf32>
    %3 = vector.multi_reduction <add>, %2, %cst [0] : vector<34x128xf32> to vector<128xf32>
    %4 = vector.shape_cast %3 : vector<128xf32> to vector<1x128xf32>
    %5 = arith.negf %4 : vector<1x128xf32>
    %6 = math.exp %5 : vector<1x128xf32>
    %cst_3 = arith.constant 1.000000e+00 : f32
    %7 = vector.broadcast %cst_3 : f32 to vector<1x128xf32>
    %8 = arith.addf %7, %6 : vector<1x128xf32>
    %9 = arith.divf %7, %8 : vector<1x128xf32>
    %c0_4 = arith.constant 0 : index
    %c0_5 = arith.constant 0 : index
    %10 = vector.load %arg3[%c0_4, %c0_5] : memref<1x128xf32, #tpu.memory_space<vmem>>, vector<1x128xf32>
    tpu.vector_store %arg3[%c0_4, %c0_5], %9 {strides = array<i32>} : memref<1x128xf32, #tpu.memory_space<vmem>>, vector<1x128xf32>,
    return
  }
  func.func @transform_0(%arg0: i32) -> (i32, i32) {
    %c0_i32 = arith.constant 0 : i32
    %c0_i32_0 = arith.constant 0 : i32
    return %c0_i32, %arg0 : i32, i32
  }
  func.func @transform_1(%arg0: i32) -> (i32, i32) {
    %c0_i32 = arith.constant 0 : i32
    %c0_i32_0 = arith.constant 0 : i32
    return %c0_i32, %arg0 : i32, i32
  }
  func.func @transform_2(%arg0: i32) -> (i32, i32) {
    %c0_i32 = arith.constant 0 : i32
    %c0_i32_0 = arith.constant 0 : i32
    return %c0_i32, %arg0 : i32, i32
  }
}

</mosaic_0001>

<bundles_post_ra>
// kernel: tpu_custom_call.1
= control target key start
LH: loop header
LB: loop body
LE: loop exit
PB: predicated region body
PF: predicated region fallthrough
CT: control target
= control target key end

     0   :  { %7 = vsyncpa [#allocation3], 0  ;;  %s228_s0 = inlined_call_operand.hbm [shape: f32[34,128], index: 0, kind: input, shape index: {}]   ;;  %s229_s1 = inlined_call_operand.hbm [shape: f32[34,128], index: 1, kind: input, shape index: {}]   ;;  %s230_s2 = inlined_call_operand.hbm [shape: f32[1,128], index: 2, kind: output, shape index: {}]  }
   0x1   :  { %8 = vsyncpa [#allocation6], 0 }
   0x2   :  { %9 = vsyncpa [#allocation4], 0  ;;  %s172_s9 = smov [#allocation2]   ;;  %s100_s13 = scalar_lea.hbm %s228_s0, 640 }
   0x3   :  { %s15_s10 = sshll.u32 %s172_s9, 4  ;;  %p101_p0 = scmp.ne.s32.totalorder %s228_s0, %s100_s13  ;;  %s16_s10 = int_to_ptr.vmem [resolvable:$true] %s15_s10 }
   0x4   :  { %p104_p1 = scmp.lt.u32.totalorder %s100_s13, %s228_s0 }
   0x6   :  { %p106_p2 = pnand %p104_p1, %p101_p0 }
   0x8   :  { %109 = shalt.err (!%p106_p2)
}
   0x9   :  { %s110_s18 = scalar_lea.vmem %s16_s10, 640  ;;  %p115_p4 = scmp.lt.s32.totalorder %s16_s10, %s16_s10 }
   0xa   :  { %p111_p3 = scmp.ne.s32.totalorder %s16_s10, %s110_s18  ;;  %p116_p5 = scmp.lt.s32.totalorder %s110_s18, %s110_s18 }
   0xc   :  { %p117_p6 = por %p116_p5, %p115_p4 }
   0xe   :  { %p118_p7 = pnand %p117_p6, %p111_p3 }
  0x10   :  { %121 = shalt.err (!%p118_p7)
}
  0x11   :  { %s173_s19 = smov 128   ;;  %s174_s20 = smov 8  }
  0x12   :  { %21 = dma.hbm_to_vmem [thread:$0]  %s228_s0, 640, %s16_s10, [#allocation3], %s173_s19, %s173_s19, %s174_s20  }
  0x13   :  { %s175_s23 = smov [#allocation5]   ;;  %s122_s27 = scalar_lea.hbm %s229_s1, 640 }
  0x14   :  { %s27_s24 = sshll.u32 %s175_s23, 4  ;;  %p123_p8 = scmp.ne.s32.totalorder %s229_s1, %s122_s27  ;;  %s28_s24 = int_to_ptr.vmem [resolvable:$true] %s27_s24 }
  0x15   :  { %p126_p9 = scmp.lt.u32.totalorder %s122_s27, %s229_s1 }
  0x17   :  { %p128_p10 = pnand %p126_p9, %p123_p8 }
  0x19   :  { %131 = shalt.err (!%p128_p10)
}
  0x1a   :  { %s132_s4 = scalar_lea.vmem %s28_s24, 640  ;;  %p137_p12 = scmp.lt.s32.totalorder %s28_s24, %s28_s24 }
  0x1b   :  { %p133_p11 = scmp.ne.s32.totalorder %s28_s24, %s132_s4  ;;  %p138_p13 = scmp.lt.s32.totalorder %s132_s4, %s132_s4 }
  0x1d   :  { %p139_p0 = por %p138_p13, %p137_p12 }
  0x1f   :  { %p140_p1 = pnand %p139_p0, %p133_p11 }
  0x21   :  { %143 = shalt.err (!%p140_p1)
}
  0x22   :  { %33 = dma.hbm_to_vmem [thread:$0]  %s229_s1, 640, %s28_s24, [#allocation6], %s173_s19, %s173_s19, %s174_s20  }
  0x23   :  { %166 = dma.done.wait [#allocation3], 640  }
  0x24   :  { %167 = vsyncadd [#allocation3], 4294966656 }
  0x25   :  { %168 = dma.done.wait [#allocation6], 640  }
  0x26   :  { %169 = vsyncadd [#allocation6], 4294966656  ;;  %v40_v0 = vld [vmem:[#allocation2] sm:$0xff]  ;;  %v41_v1 = vld [vmem:[#allocation2 + $0x8] sm:$0xff]  ;;  %vm58_vm0 = vcmask 1041408   ;;  %s176_s1 = smov [#allocation7]  }
  0x27   :  { %v42_v2 = vld [vmem:[#allocation2 + $0x10] sm:$0xff]  ;;  %v43_v3 = vld [vmem:[#allocation2 + $0x18] sm:$0xff]  ;;  %v44_v4 = vld [vmem:[#allocation2 + $0x20] sm:$0x3]  ;;  %s80_s6 = sshll.u32 %s176_s1, 4  ;;  %s81_s6 = int_to_ptr.vmem [resolvable:$true] %s80_s6 }
  0x28   :  { %v45_v5 = vld [vmem:[#allocation5] sm:$0xff]  ;;  %v46_v6 = vld [vmem:[#allocation5 + $0x8] sm:$0xff]  ;;  %v47_v7 = vld [vmem:[#allocation5 + $0x10] sm:$0xff]  ;;  %s144_s7 = scalar_lea.vmem %s81_s6, 16  ;;  %s148_s8 = scalar_lea.vmem %s81_s6, 32 }
  0x29   :  { %v48_v8 = vld [vmem:[#allocation5 + $0x18] sm:$0xff]  ;;  %v50_v9 = vmul.f32 %v45_v5, %v40_v0  ;;  %v49_v10 = vld [vmem:[#allocation5 + $0x20] sm:$0x3]  ;;  %v51_v11 = vmul.f32 %v46_v6, %v41_v1  ;;  %v52_v12 = vmul.f32 %v47_v7, %v42_v2  ;;  %p145_p2 = scmp.ne.s32.totalorder %s81_s6, %s144_s7  ;;  %p149_p3 = scmp.lt.s32.totalorder %s81_s6, %s81_s6 }
  0x2a   :  { %v54_v13 = vmul.f32 %v49_v10, %v44_v4  ;;  %v53_v14 = vmul.f32 %v48_v8, %v43_v3  ;;  %p150_p4 = scmp.lt.s32.totalorder %s148_s8, %s144_s7 }
  0x2b   :  { %v55_v15 = vadd.f32 %v51_v11, %v50_v9 }
  0x2c   :  { %v59_v17 = vsel %vm58_vm0, %v54_v13, 0.0  ;;  %p151_p5 = por %p150_p4, %p149_p3 }
  0x2d   :  { %v56_v16 = vadd.f32 %v55_v15, %v52_v12 }
  0x2e   :  { %p152_p6 = pnand %p151_p5, %p145_p2 }
  0x2f   :  { %v57_v18 = vadd.f32 %v56_v16, %v53_v14 }
  0x31   :  { %v60_v19 = vadd.f32 %v59_v17, %v57_v18 }
  0x33   :  { %v61_v20 = vrot.slane %v60_v19, 4 }
  0x35   :  { %v62_v21 = vadd.f32 %v61_v20, %v60_v19 }
  0x37   :  { %v63_v22 = vrot.slane %v62_v21, 2 }
  0x39   :  { %v64_v23 = vadd.f32 %v63_v22, %v62_v21 }
  0x3b   :  { %v65_v24 = vrot.slane %v64_v23, 1 }
  0x3d   :  { %v66_v25 = vadd.f32 %v65_v24, %v64_v23 }
  0x3f   :  { %v90_v26 = vmul.f32 -1.442695, %v66_v25 }
  0x41   :  { %96 = vpow2.f32 %v90_v26 }
  0x4b   :  { %v97_v27 = vpop.eup %96 }
  0x4c   :  { %v70_v28 = vadd.f32 1.0, %v97_v27 }
  0x4e   :  { %98 = vrcp.f32 %v70_v28 }
  0x58   :  { %v99_v29 = vpop.eup %98 }
  0x59   :  { %73 = vst [vmem:[#allocation7] sm:$0x1] %v99_v29 }
  0x5a   :  { %155 = shalt.err (!%p152_p6)
}
  0x5b   :  { %s156_s11 = scalar_lea.hbm %s230_s2, 16 }
  0x5c   :  { %p157_p7 = scmp.ne.s32.totalorder %s230_s2, %s156_s11  ;;  %p160_p8 = scmp.lt.u32.totalorder %s156_s11, %s230_s2 }
  0x5e   :  { %p162_p9 = pnand %p160_p8, %p157_p7 }
  0x60   :  { %165 = shalt.err (!%p162_p9)
}
  0x61   :  { %83 = dma.vmem_to_hbm [thread:$0]  %s81_s6, 16, %s230_s2, [#allocation4]  }
  0x62   :  { %170 = dma.done.wait [#allocation4], 16  }
  0x63   :  { %171 = vsyncadd [#allocation4], 4294967280 }
  0x64   :  { %87 = vsyncpa [#allocation3], 1 }
  0x65   :  { %88 = vsyncpa [#allocation6], 1 }
  0x66   :  { %89 = vsyncpa [#allocation4], 1 }

</bundles_post_ra>
